<compile_context>
chip_gen: v6e
topology: v6e:2x2x1
jax: 0.10.0
libtpu: 0.0.40
codegen_flags: <defaults>
</compile_context>

<pallas_src>
import functools

import numpy as np
import jax
import jax.numpy as jnp
from jax.experimental import pallas as pl
from jax.experimental.pallas import tpu as pltpu

H = W = 9                 # board size implied by fc1 in-features (32*9*9 = 2592)
IN_CHANNELS = 7
CIN_PAD = 8               # layer-1 input channels zero-padded 7 -> 8 (sublane align)
NUM_ACTIONS = 81 * 81     # 6561
FC2_N_PAD = 6656          # 52*128: lane-dense, divides evenly into fc2 tiles
FC2_TILE_N = 1664         # 13*128: 4 streamed wf2 column tiles
ROWS_PER_IMG = 128        # 81 board positions padded to 128 lanes per sample

_ROLL_SIGN = None         # cached pltpu.roll direction: out[i] = in[(i + sign*k) % n]


def _roll_semantics_sign():
    """Probe pltpu.roll once: returns sign s with roll(x,k,ax)[i] == x[(i+s*k)%n]."""
    global _ROLL_SIGN
    if _ROLL_SIGN is None:
        def _kern(x_ref, o_ref):
            o_ref[...] = pltpu.roll(x_ref[...], 1, 1)

        x = jnp.broadcast_to(jnp.arange(128, dtype=jnp.float32), (8, 128))
        y = pl.pallas_call(
            _kern, out_shape=jax.ShapeDtypeStruct((8, 128), jnp.float32))(x)
        v = float(jax.device_get(y)[0, 0])
        if v == 127.0:
            _ROLL_SIGN = -1          # jnp.roll-style semantics
        elif v == 1.0:
            _ROLL_SIGN = +1
        else:
            raise RuntimeError(f"unexpected pltpu.roll probe value: {v}")
    return _ROLL_SIGN


# ---------------------------------------------------------------------------
# Fused conv stack: 4x (3x3 conv + bias + ReLU), channel-major activations
# (C, B*128) kept entirely in VMEM.  Each tap is a lane roll + boundary mask
# followed by a (Cout, Cin) @ (Cin, B*128) MXU matmul accumulated in f32.
# ---------------------------------------------------------------------------
def _conv_stack_kernel(x_ref, m_ref,
                       w1_ref, b1_ref, w2_ref, b2_ref,
                       w3_ref, b3_ref, w4_ref, b4_ref, o_ref, *, shifts):
    masks = [m_ref[t] for t in range(9)]                 # each (1, B*128) f32

    def conv_layer(x, w_ref, b_ref):
        cout = w_ref.shape[1]
        acc = jnp.zeros((cout, x.shape[1]), jnp.float32)
        for t in range(9):                               # static unroll: 9 taps
            shifted = pltpu.roll(x, shifts[t], 1) if shifts[t] else x
            patches = shifted * masks[t]                 # zero invalid taps
            acc = acc + jnp.dot(w_ref[t], patches,
                                preferred_element_type=jnp.float32)
        return jnp.maximum(acc + b_ref[...], 0.0)

    x = x_ref[...]
    x = conv_layer(x, w1_ref, b1_ref)
    x = conv_layer(x, w2_ref, b2_ref)
    x = conv_layer(x, w3_ref, b3_ref)
    x = conv_layer(x, w4_ref, b4_ref)
    o_ref[...] = x


def _full_block(a):
    nd = a.ndim
    return pl.BlockSpec(a.shape, lambda i, _nd=nd: (0,) * _nd)


def conv_stack(x_cm, kp):
    """x_cm: (CIN_PAD, B*128) f32 channel-major -> (32, B*128) f32."""
    cin, m = x_cm.shape
    assert cin == CIN_PAD and kp["masks"].shape == (9, 1, m), (x_cm.shape, m)
    sign = _roll_semantics_sign()
    # tap t = (dh+1)*3 + (dw+1); lane offset of the source row is dh*W + dw
    shifts = tuple((sign * ((t // 3 - 1) * W + (t % 3 - 1))) % m for t in range(9))
    kernel = functools.partial(_conv_stack_kernel, shifts=shifts)
    args = (x_cm, kp["masks"], kp["w1"], kp["b1"], kp["w2"], kp["b2"],
            kp["w3"], kp["b3"], kp["w4"], kp["b4"])
    return pl.pallas_call(
        kernel,
        out_shape=jax.ShapeDtypeStruct((32, m), jnp.float32),
        grid=(1,),
        in_specs=[_full_block(a) for a in args],
        out_specs=pl.BlockSpec((32, m), lambda i: (0, 0)),
        compiler_params=pltpu.CompilerParams(
            dimension_semantics=("arbitrary",),
            vmem_limit_bytes=32 << 20),
    )(*args)


# ---------------------------------------------------------------------------
# Fused fc1 + fc2: fc1 (2592 -> 512) runs once into a bf16 VMEM scratch while
# the bf16 wf2 (512 x 6656) streams through 4 double-buffered column tiles,
# each consumed with a native-bf16 MXU matmul accumulated in f32.
# ---------------------------------------------------------------------------
def _fc_fused_kernel(x_ref, wf1_ref, bf1_ref, wf2_ref, bf2_ref, o_ref, h_ref):
    @pl.when(pl.program_id(0) == 0)
    def _():
        xb = x_ref[...].astype(jnp.bfloat16)
        h = jnp.dot(xb, wf1_ref[...], preferred_element_type=jnp.float32)
        h = jnp.maximum(h + bf1_ref[...], 0.0)
        h_ref[...] = h.astype(jnp.bfloat16)

    out = jnp.dot(h_ref[...], wf2_ref[...], preferred_element_type=jnp.float32)
    o_ref[...] = out + bf2_ref[...]


def fc_fused(xflat, kp, *, tile_n=FC2_TILE_N):
    m, k = xflat.shape                 # (B, 2592) f32
    kf1, nh = kp["wf1"].shape          # (2592, 512) bf16
    nh2, n = kp["wf2"].shape           # (512, 6656) bf16
    assert k == kf1 and nh == nh2 and n % tile_n == 0
    return pl.pallas_call(
        _fc_fused_kernel,
        out_shape=jax.ShapeDtypeStruct((m, n), jnp.float32),
        grid=(n // tile_n,),
        in_specs=[
            pl.BlockSpec((m, k), lambda j: (0, 0)),        # activations (tiny)
            pl.BlockSpec((kf1, nh), lambda j: (0, 0)),     # wf1, VMEM-resident
            pl.BlockSpec((1, nh), lambda j: (0, 0)),       # bf1
            pl.BlockSpec((nh, tile_n), lambda j: (0, j)),  # wf2 column tile (streams)
            pl.BlockSpec((1, tile_n), lambda j: (0, j)),   # bf2 tile
        ],
        out_specs=pl.BlockSpec((m, tile_n), lambda j: (0, j)),
        scratch_shapes=[pltpu.VMEM((m, nh), jnp.bfloat16)],
        compiler_params=pltpu.CompilerParams(
            dimension_semantics=("arbitrary",),            # sequential: j==0 gate
            vmem_limit_bytes=32 << 20),
    )(xflat, kp["wf1"], kp["bf1"], kp["wf2"], kp["bf2"])


# ---------------------------------------------------------------------------
# Parameters (deterministic synthetic init; no checkpoint loading).
# FC weights are stored in bfloat16 — the forward is HBM-BW bound on them.
# ---------------------------------------------------------------------------
def init_params(key):
    ks = jax.random.split(key, 12)

    def conv_w(k, cin, cout):
        return jax.random.normal(k, (3, 3, cin, cout), jnp.float32) / np.sqrt(9 * cin)

    def fc_w(k, fin, fout):
        w = jax.random.normal(k, (fin, fout), jnp.float32) / np.sqrt(fin)
        return w.astype(jnp.bfloat16)

    def bias(k, n):
        return 0.01 * jax.random.normal(k, (n,), jnp.float32)

    return {
        "w1": conv_w(ks[0], IN_CHANNELS, 32), "b1": bias(ks[1], 32),
        "w2": conv_w(ks[2], 32, 64),          "b2": bias(ks[3], 64),
        "w3": conv_w(ks[4], 64, 64),          "b3": bias(ks[5], 64),
        "w4": conv_w(ks[6], 64, 32),          "b4": bias(ks[7], 32),
        "wf1": fc_w(ks[8], 32 * H * W, 512),   "bf1": bias(ks[9], 512),
        "wf2": fc_w(ks[10], 512, NUM_ACTIONS), "bf2": bias(ks[11], NUM_ACTIONS),
    }


def prepare_kernel_params(params, batch):
    """One-time prep: roll probe, per-tap masks, tap-major conv weights, fc2 pad."""
    _roll_semantics_sign()                              # prime cache outside jit
    m = batch * ROWS_PER_IMG
    masks = np.zeros((9, 1, m), np.float32)             # 1 iff tap t valid at lane r
    for t in range(9):
        dh, dw = t // 3 - 1, t % 3 - 1
        for b in range(batch):
            for p in range(H * W):
                i, j = p // W, p % W
                if 0 <= i + dh < H and 0 <= j + dw < W:
                    masks[t, 0, b * ROWS_PER_IMG + p] = 1.0
    kp = {"masks": jnp.asarray(masks)}
    for l in range(1, 5):
        w = params[f"w{l}"]                              # (3, 3, Cin, Cout) f32
        cin, cout = w.shape[2], w.shape[3]
        wt = jnp.transpose(w.reshape(9, cin, cout), (0, 2, 1))   # (9, Cout, Cin)
        if l == 1:                                       # pad Cin 7 -> 8 (zeros)
            wt = jnp.pad(wt, ((0, 0), (0, 0), (0, CIN_PAD - cin)))
        kp[f"w{l}"] = wt
        kp[f"b{l}"] = params[f"b{l}"].reshape(-1, 1)     # (Cout, 1)
    kp["wf1"] = params["wf1"]                            # (2592, 512) bf16, NCHW rows
    kp["bf1"] = params["bf1"].reshape(1, -1)
    npad = FC2_N_PAD - NUM_ACTIONS
    kp["wf2"] = jnp.pad(params["wf2"], ((0, 0), (0, npad)))      # zero columns
    kp["bf2"] = jnp.pad(params["bf2"], (0, npad)).reshape(1, -1)
    return kp


# ---------------------------------------------------------------------------
# Forward pass (input is NCHW, same as PyTorch).
# ---------------------------------------------------------------------------
@jax.jit
def dqn_forward(kparams, x_nchw):
    B = x_nchw.shape[0]
    # NCHW -> channel-major (C, B*128): lane r = b*128 + (i*9 + j), 81 -> 128 pad
    x = jnp.transpose(x_nchw.reshape(B, IN_CHANNELS, H * W), (1, 0, 2))
    x = jnp.pad(x, ((0, 0), (0, 0), (0, ROWS_PER_IMG - H * W)))
    x = x.reshape(IN_CHANNELS, B * ROWS_PER_IMG)
    x = jnp.pad(x, ((0, CIN_PAD - IN_CHANNELS), (0, 0)))          # (8, B*128)

    y = conv_stack(x, kparams)                                    # (32, B*128) f32

    # PyTorch view(B, -1) on NCHW: feature index = c*81 + i*9 + j
    y = y.reshape(32, B, ROWS_PER_IMG)[:, :, :H * W]              # (32, B, 81)
    y = jnp.transpose(y, (1, 0, 2)).reshape(B, 32 * H * W)        # (B, 2592)

    out = fc_fused(y, kparams)                                    # (B, 6656) f32
    return out[:, :NUM_ACTIONS]                                   # drop zero pad


# ---------------------------------------------------------------------------
# Pure-JAX reference (PyTorch semantics; consumes the SAME stored weights).
# ---------------------------------------------------------------------------
def dqn_reference(params, x_nchw):
    def conv(x, w_hwio, b):
        w_oihw = jnp.transpose(w_hwio, (3, 2, 0, 1))
        y = jax.lax.conv_general_dilated(
            x, w_oihw, window_strides=(1, 1), padding="SAME",
            dimension_numbers=("NCHW", "OIHW", "NCHW"),
            precision=jax.lax.Precision.HIGHEST)
        return jax.nn.relu(y + b[None, :, None, None])

    x = conv(x_nchw, params["w1"], params["b1"])
    x = conv(x, params["w2"], params["b2"])
    x = conv(x, params["w3"], params["b3"])
    x = conv(x, params["w4"], params["b4"])
    x = x.reshape(x.shape[0], -1)                  # PyTorch view(B,-1): NCHW order
    x = jax.nn.relu(jnp.dot(x, params["wf1"].astype(jnp.float32),
                            precision=jax.lax.Precision.HIGHEST) + params["bf1"])
    return jnp.dot(x, params["wf2"].astype(jnp.float32),
                   precision=jax.lax.Precision.HIGHEST) + params["bf2"]


if __name__ == "__main__":
    key = jax.random.PRNGKey(0)
    pkey, xkey = jax.random.split(key)
    params = init_params(pkey)

    # (B, C, H, W) = (2, 7, 9, 9), consistent with fc1's 2592 in-features.
    x = jax.random.normal(xkey, (2, IN_CHANNELS, H, W), jnp.float32)

    kparams = prepare_kernel_params(params, batch=2)
    out = jax.block_until_ready(dqn_forward(kparams, x))
    assert out.shape == (2, NUM_ACTIONS), out.shape

    ref = jax.block_until_ready(dqn_reference(params, x))
    np.testing.assert_allclose(np.asarray(out), np.asarray(ref), rtol=1e-2, atol=1e-2)

    print("KERNEL_OK")
</pallas_src>

<mosaic_0001>
module attributes {stable_mosaic.version = 11 : i64} {
  func.func @_kern(%arg0: memref<8x128xf32, #tpu.memory_space<vmem>>, %arg1: memref<8x128xf32, #tpu.memory_space<vmem>>) attributes {dimension_semantics = [], scalar_prefetch = 0 : i64, scratch_operands = 0 : i64, tpu.core_type = #tpu.core_type<tc>} {
    %c0 = arith.constant 0 : index
    %c0_0 = arith.constant 0 : index
    %0 = vector.load %arg0[%c0, %c0_0] : memref<8x128xf32, #tpu.memory_space<vmem>>, vector<8x128xf32>
    %c1_i32 = arith.constant 1 : i32
    %1 = tpu.dynamic_rotate %0 by %c1_i32 dim 1 : vector<8x128xf32>, i32 -> vector<8x128xf32>
    %c0_1 = arith.constant 0 : index
    %c0_2 = arith.constant 0 : index
    %2 = vector.load %arg1[%c0_1, %c0_2] : memref<8x128xf32, #tpu.memory_space<vmem>>, vector<8x128xf32>
    tpu.vector_store %arg1[%c0_1, %c0_2], %1 {strides = array<i32>} : memref<8x128xf32, #tpu.memory_space<vmem>>, vector<8x128xf32>,
    return
  }
}

</mosaic_0001>

<bundles_post_ra>
// kernel: tpu_custom_call.1
= control target key start
LH: loop header
LB: loop body
LE: loop exit
PB: predicated region body
PF: predicated region fallthrough
CT: control target
= control target key end

     0   :  { %6 = vsyncpa [#allocation3], 0  ;;  %s106_s0 = inlined_call_operand.hbm [shape: f32[8,128], index: 0, kind: input, shape index: {}]   ;;  %s107_s1 = inlined_call_operand.hbm [shape: f32[8,128], index: 1, kind: output, shape index: {}]  }
   0x1   :  { %7 = vsyncpa [#allocation4], 0  ;;  %s87_s6 = smov [#allocation2]  }
   0x2   :  { %s14_s7 = sshll.u32 %s87_s6, 4  ;;  %s15_s7 = int_to_ptr.vmem [resolvable:$true] %s14_s7 }
   0x3   :  { %s51_s8 = scalar_lea.vmem %s15_s7, 128  ;;  %p56_p1 = scmp.lt.s32.totalorder %s15_s7, %s15_s7 }
   0x4   :  { %p52_p0 = scmp.ne.s32.totalorder %s15_s7, %s51_s8  ;;  %p57_p2 = scmp.lt.s32.totalorder %s51_s8, %s51_s8 }
   0x6   :  { %p58_p3 = por %p57_p2, %p56_p1 }
   0x8   :  { %p59_p4 = pnand %p58_p3, %p52_p0 }
   0xa   :  { %62 = shalt.err (!%p59_p4)
}
   0xb   :  { %17 = dma.hbm_to_vmem [thread:$0]  %s106_s0, 128, %s15_s7, [#allocation3]  }
   0xc   :  { %83 = dma.done.wait [#allocation3], 128  }
   0xd   :  { %84 = vsyncadd [#allocation3], 4294967168  ;;  %v21_v0 = vld [vmem:[#allocation2] sm:$0xff]  ;;  %s88_s11 = smov 1   ;;  %s89_s12 = smov [#allocation5]  }
   0xe   :  { %22 = vrot.lane.b32.xlu0 %v21_v0, %s88_s11  ;;  %s31_s13 = sshll.u32 %s89_s12, 4  ;;  %s32_s13 = int_to_ptr.vmem [resolvable:$true] %s31_s13 }
   0xf   :  { %s63_s14 = scalar_lea.vmem %s32_s13, 128  ;;  %p68_p6 = scmp.lt.s32.totalorder %s32_s13, %s32_s13 }
  0x10   :  { %p64_p5 = scmp.ne.s32.totalorder %s32_s13, %s63_s14  ;;  %p69_p7 = scmp.lt.s32.totalorder %s63_s14, %s63_s14 }
  0x12   :  { %p70_p8 = por %p69_p7, %p68_p6 }
  0x14   :  { %p71_p9 = pnand %p70_p8, %p64_p5 }
  0x80   :  { %v23_v1 = vpop.permute.xlu0 %22 }
  0x81   :  { %24 = vst [vmem:[#allocation5] sm:$0xff] %v23_v1 }
  0x82   :  { %74 = shalt.err (!%p71_p9)
}
  0x83   :  { %34 = dma.vmem_to_hbm [thread:$0]  %s32_s13, 128, %s107_s1, [#allocation4]  }
  0x84   :  { %85 = dma.done.wait [#allocation4], 128  }
  0x85   :  { %86 = vsyncadd [#allocation4], 4294967168 }
  0x86   :  { %38 = vsyncpa [#allocation3], 1 }
  0x87   :  { %39 = vsyncpa [#allocation4], 1 }

</bundles_post_ra>
